<compile_context>
chip_gen: v7x
topology: tpu7x:2x2x1
jax: 0.10.0
libtpu: 0.0.40
codegen_flags: <defaults>
</compile_context>

<pallas_src>
import functools
import math

import jax
import jax.numpy as jnp
from jax import lax
from jax.experimental import pallas as pl
from jax.experimental.pallas import tpu as pltpu


def _pe_kernel(seed_ref, x_ref, pe_ref, o_ref, *, dropout_p: float, training: bool):
    x = x_ref[...]
    y = x + pe_ref[...].astype(x.dtype)  # pe broadcasts over batch in the 3D path

    if training and dropout_p > 0.0:
        shape = y.shape
        block_rows = shape[0]
        # Global linear element index -> unique hash counter per element / block.
        i_row = lax.broadcasted_iota(jnp.int32, shape, 0)
        if y.ndim == 3:
            i_col = (lax.broadcasted_iota(jnp.int32, shape, 1) * shape[2]
                     + lax.broadcasted_iota(jnp.int32, shape, 2))
            row_len = shape[1] * shape[2]
        else:
            i_col = lax.broadcasted_iota(jnp.int32, shape, 1)
            row_len = shape[1]
        global_row = pl.program_id(0) * block_rows + i_row
        lin = (global_row * row_len + i_col).astype(jnp.uint32)

        # lowbias32 stateless hash (good avalanche on sequential counters).
        h = lin ^ seed_ref[0].astype(jnp.uint32)
        h = h ^ (h >> 16)
        h = h * jnp.uint32(0x7FEB352D)
        h = h ^ (h >> 15)
        h = h * jnp.uint32(0x846CA68B)
        h = h ^ (h >> 16)

        # keep with prob (1 - p): raw-bits integer threshold compare.
        thresh = jnp.uint32(min(int(round(dropout_p * (2.0 ** 32))), 2 ** 32 - 1))
        keep = h >= thresh
        scale = jnp.asarray(1.0 / (1.0 - dropout_p), y.dtype)
        y = jnp.where(keep, y * scale, jnp.zeros((), y.dtype))

    o_ref[...] = y.astype(o_ref.dtype)


def make_positional_encoding(d_model: int, max_len: int = 65) -> jnp.ndarray:
    """Deterministically build the pe buffer, shape (max_len, 1, d_model)."""
    position = jnp.arange(0, max_len, dtype=jnp.float32)[:, None]              # (L, 1)
    div_term = jnp.exp(
        jnp.arange(0, d_model, 2, dtype=jnp.float32) * (-math.log(10000.0) / d_model)
    )                                                                            # (D/2,)
    args = position * div_term                                                   # (L, D/2)
    pe = jnp.zeros((max_len, d_model), dtype=jnp.float32)
    pe = pe.at[:, 0::2].set(jnp.sin(args))
    pe = pe.at[:, 1::2].set(jnp.cos(args))
    return pe[:, None, :]                                                        # (L, 1, D)


def positional_encoding_forward(
    x: jnp.ndarray,
    pe: jnp.ndarray,
    *,
    dropout_p: float = 0.1,
    training: bool = False,
    seed: int = 0,
) -> jnp.ndarray:
    """x: (S, B, D); pe: (max_len, 1, D). Returns dropout(x + pe[:S])."""
    S, B, D = x.shape
    pe_s = pe[:S]                                           # (S, 1, D)
    seed_arr = jnp.array([seed], dtype=jnp.int32)
    itemsize = jnp.dtype(x.dtype).itemsize

    lane_dense_d = (D % 128 == 0)
    if lane_dense_d:
        # Realistic d_model: last dim is already lane-dense; keep 3D blocks and
        # broadcast pe over batch inside the kernel (pe read once per seq pos).
        x_in = x
        pe_in = pe_s.astype(x.dtype)                        # (S, 1, D), tiny
    else:
        # Small d_model: flatten (B, D) into the lane axis so stores pack more
        # useful lanes per vreg; pe is tiny, so pre-broadcasting it is cheap.
        x_in = x.reshape(S, B * D)
        pe_in = jnp.broadcast_to(pe_s, (S, B, D)).reshape(S, B * D).astype(x.dtype)

    row_elems = B * D
    row_bytes = row_elems * itemsize
    target_block_bytes = 2 * 1024 * 1024                    # ~2 MiB blocks (fits v7x VMEM budget)
    if S <= 8:
        tile_s = S                                          # block == full dim -> always legal
    else:
        tile_s = max(8, min(S, (target_block_bytes // max(row_bytes, 1)) // 8 * 8))
    grid = (pl.cdiv(S, tile_s),)

    if lane_dense_d:
        x_spec = pl.BlockSpec((tile_s, B, D), lambda i, seed: (i, 0, 0))
        pe_spec = pl.BlockSpec((tile_s, 1, D), lambda i, seed: (i, 0, 0))
        out_spec = pl.BlockSpec((tile_s, B, D), lambda i, seed: (i, 0, 0))
        out_shape = jax.ShapeDtypeStruct((S, B, D), x.dtype)
        pe_block_bytes = tile_s * D * itemsize
    else:
        x_spec = pl.BlockSpec((tile_s, B * D), lambda i, seed: (i, 0))
        pe_spec = pl.BlockSpec((tile_s, B * D), lambda i, seed: (i, 0))
        out_spec = pl.BlockSpec((tile_s, B * D), lambda i, seed: (i, 0))
        out_shape = jax.ShapeDtypeStruct((S, B * D), x.dtype)
        pe_block_bytes = tile_s * B * D * itemsize

    block_bytes = tile_s * row_bytes
    # 2 inputs + 1 output, double-buffered, + headroom; clamp to sane range.
    vmem_limit = min(max(2 * (2 * block_bytes + pe_block_bytes) + (2 << 20), 8 << 20), 32 << 20)

    kernel = functools.partial(
        _pe_kernel, dropout_p=float(dropout_p), training=bool(training)
    )

    out = pl.pallas_call(
        kernel,
        out_shape=out_shape,
        grid_spec=pltpu.PrefetchScalarGridSpec(
            num_scalar_prefetch=1,          # seed lives in SMEM
            grid=grid,
            in_specs=[x_spec, pe_spec],
            out_specs=out_spec,
        ),
        compiler_params=pltpu.CompilerParams(
            dimension_semantics=("parallel",),   # independent tiles -> megacore-shardable
            vmem_limit_bytes=int(vmem_limit),
        ),
    )(seed_arr, x_in, pe_in)

    return out.reshape(S, B, D)


if __name__ == "__main__":
    key = jax.random.PRNGKey(0)

    # --- Small d_model path (flattened lane-packed 2D layout) -----------------
    d_model, max_len, seq_len, batch = 32, 65, 8, 2
    x = jax.random.normal(key, (seq_len, batch, d_model), dtype=jnp.float32)
    pe = make_positional_encoding(d_model, max_len)

    # Eval mode (dropout = identity): exact check vs x + pe[:S]
    out_eval = jax.block_until_ready(
        positional_encoding_forward(x, pe, dropout_p=0.1, training=False)
    )
    ref = x + pe[:seq_len]
    assert out_eval.shape == (seq_len, batch, d_model)
    assert jnp.allclose(out_eval, ref, atol=1e-6), "eval-mode mismatch vs reference"

    # Training mode: every output element is either dropped (0) or ref / (1-p).
    out_train = jax.block_until_ready(
        positional_encoding_forward(x, pe, dropout_p=0.1, training=True, seed=1234)
    )
    assert out_train.shape == (seq_len, batch, d_model)
    ok = (out_train == 0) | jnp.isclose(out_train, ref / 0.9, rtol=1e-5, atol=1e-5)
    assert bool(jnp.all(ok)), "training-mode dropout semantics mismatch"

    # --- Lane-dense d_model path (3D blocks, pe broadcast in-kernel) ----------
    d_model2 = 128
    x2 = jax.random.normal(jax.random.PRNGKey(1), (seq_len, batch, d_model2), dtype=jnp.float32)
    pe2 = make_positional_encoding(d_model2, max_len)
    out2 = jax.block_until_ready(positional_encoding_forward(x2, pe2, training=False))
    ref2 = x2 + pe2[:seq_len]
    assert jnp.allclose(out2, ref2, atol=1e-6), "lane-dense path mismatch vs reference"

    print("KERNEL_OK")
</pallas_src>

<mosaic_0001>
module attributes {stable_mosaic.version = 11 : i64} {
  func.func @_pe_kernel(%arg0: i32, %arg1: memref<1xi32, #tpu.memory_space<smem>>, %arg2: memref<8x64xf32, #tpu.memory_space<vmem>>, %arg3: memref<8x64xf32, #tpu.memory_space<vmem>>, %arg4: memref<8x64xf32, #tpu.memory_space<vmem>>) attributes {dimension_semantics = [#tpu.dimension_semantics<parallel>], iteration_bounds = array<i64: 1>, scalar_prefetch = 1 : i64, scratch_operands = 0 : i64, tpu.core_type = #tpu.core_type<tc>, window_params = [{transform_indices = @transform_0, window_bounds = array<i64: 8, 64>}, {transform_indices = @transform_1, window_bounds = array<i64: 8, 64>}, {transform_indices = @transform_2, window_bounds = array<i64: 8, 64>}]} {
    %c0 = arith.constant 0 : index
    %c0_0 = arith.constant 0 : index
    %0 = vector.load %arg2[%c0, %c0_0] : memref<8x64xf32, #tpu.memory_space<vmem>>, vector<8x64xf32>
    %c0_1 = arith.constant 0 : index
    %c0_2 = arith.constant 0 : index
    %1 = vector.load %arg3[%c0_1, %c0_2] : memref<8x64xf32, #tpu.memory_space<vmem>>, vector<8x64xf32>
    %2 = arith.addf %0, %1 : vector<8x64xf32>
    %c0_3 = arith.constant 0 : index
    %c0_4 = arith.constant 0 : index
    %3 = vector.load %arg4[%c0_3, %c0_4] : memref<8x64xf32, #tpu.memory_space<vmem>>, vector<8x64xf32>
    tpu.vector_store %arg4[%c0_3, %c0_4], %2 {strides = array<i32>} : memref<8x64xf32, #tpu.memory_space<vmem>>, vector<8x64xf32>,
    return
  }
  func.func @transform_0(%arg0: i32, %arg1: memref<1xi32, #tpu.memory_space<smem>>) -> (i32, i32) {
    %c0_i32 = arith.constant 0 : i32
    %c0_i32_0 = arith.constant 0 : i32
    return %arg0, %c0_i32 : i32, i32
  }
  func.func @transform_1(%arg0: i32, %arg1: memref<1xi32, #tpu.memory_space<smem>>) -> (i32, i32) {
    %c0_i32 = arith.constant 0 : i32
    %c0_i32_0 = arith.constant 0 : i32
    return %arg0, %c0_i32 : i32, i32
  }
  func.func @transform_2(%arg0: i32, %arg1: memref<1xi32, #tpu.memory_space<smem>>) -> (i32, i32) {
    %c0_i32 = arith.constant 0 : i32
    %c0_i32_0 = arith.constant 0 : i32
    return %arg0, %c0_i32 : i32, i32
  }
}

</mosaic_0001>

<bundles_post_ra>
// kernel: tpu_custom_call.1
= control target key start
LH: loop header
LB: loop body
LE: loop exit
PB: predicated region body
PF: predicated region fallthrough
CT: control target
= control target key end

     0   :  { %9 = vsyncpa [#allocation5], 0  ;;  %s193_s0 = inlined_call_operand.<no memory space> [shape: s32[1], index: 0, kind: input, shape index: {}]   ;;  %s194_s1 = inlined_call_operand.hbm [shape: f32[8,64], index: 1, kind: input, shape index: {}]   ;;  %s195_s2 = inlined_call_operand.hbm [shape: f32[8,64], index: 2, kind: input, shape index: {}]   ;;  %s196_s3 = inlined_call_operand.hbm [shape: f32[8,64], index: 3, kind: output, shape index: {}]  }
   0x1   :  { %10 = vsyncpa [#allocation8], 0 }
   0x2   :  { %11 = vsyncpa [#allocation6], 0  ;;  %s134_s12 = smov [#allocation4]   ;;  %s135_s14 = smov [#allocation7]  }
   0x3   :  { %s18_s13 = sshll.u32 %s134_s12, 4  ;;  %s28_s15 = sshll.u32 %s135_s14, 4  ;;  %s19_s13 = int_to_ptr.vmem [resolvable:$true] %s18_s13  ;;  %s29_s15 = int_to_ptr.vmem [resolvable:$true] %s28_s15 }
   0x4   :  { %s62_s17 = scalar_lea.hbm %s194_s1, 128 }
   0x5   :  { %p63_p0 = scmp.ne.s32.totalorder %s194_s1, %s62_s17  ;;  %p66_p1 = scmp.lt.u32.totalorder %s62_s17, %s194_s1 }
   0x7   :  { %p68_p2 = pnand %p66_p1, %p63_p0 }
   0x9   :  { %71 = shalt.err (!%p68_p2)
}
   0xa   :  { %s72_s22 = scalar_lea.vmem %s19_s13, 128  ;;  %p77_p4 = scmp.lt.s32.totalorder %s19_s13, %s19_s13 }
   0xb   :  { %p73_p3 = scmp.ne.s32.totalorder %s19_s13, %s72_s22  ;;  %p78_p5 = scmp.lt.s32.totalorder %s72_s22, %s72_s22 }
   0xd   :  { %p79_p6 = por %p78_p5, %p77_p4 }
   0xf   :  { %p80_p7 = pnand %p79_p6, %p73_p3 }
  0x11   :  { %83 = shalt.err (!%p80_p7)
}
  0x12   :  { %21 = dma.hbm_to_vmem [thread:$0]  %s194_s1, 128, %s19_s13, [#allocation5]  }
  0x13   :  { %s84_s27 = scalar_lea.hbm %s195_s2, 128 }
  0x14   :  { %p85_p8 = scmp.ne.s32.totalorder %s195_s2, %s84_s27  ;;  %p88_p9 = scmp.lt.u32.totalorder %s84_s27, %s195_s2 }
  0x16   :  { %p90_p10 = pnand %p88_p9, %p85_p8 }
  0x18   :  { %93 = shalt.err (!%p90_p10)
}
  0x19   :  { %s94_s5 = scalar_lea.vmem %s29_s15, 128  ;;  %p99_p12 = scmp.lt.s32.totalorder %s29_s15, %s29_s15 }
  0x1a   :  { %p95_p11 = scmp.ne.s32.totalorder %s29_s15, %s94_s5  ;;  %p100_p13 = scmp.lt.s32.totalorder %s94_s5, %s94_s5 }
  0x1c   :  { %p101_p0 = por %p100_p13, %p99_p12 }
  0x1e   :  { %p102_p1 = pnand %p101_p0, %p95_p11 }
  0x20   :  { %105 = shalt.err (!%p102_p1)
}
  0x21   :  { %31 = dma.hbm_to_vmem [thread:$0]  %s195_s2, 128, %s29_s15, [#allocation8]  }
  0x22   :  { %128 = dma.done.wait [#allocation5], 128  }
  0x23   :  { %129 = vsyncadd [#allocation5], 4294967168 }
  0x24   :  { %130 = dma.done.wait [#allocation8], 128  }
  0x25   :  { %131 = vsyncadd [#allocation8], 4294967168  ;;  %s136_s7 = smov [#allocation9]   ;;  %v38_v0 = vld [vmem:[#allocation4] sm:$0xff]  ;;  %v39_v1 = vld [vmem:[#allocation7] sm:$0xff]  ;;  %vm41_vm0 = vcmask 523264  }
  0x26   :  { %s49_s8 = sshll.u32 %s136_s7, 4  ;;  %v40_v2 = vadd.f32 %v39_v1, %v38_v0  ;;  %s50_s8 = int_to_ptr.vmem [resolvable:$true] %s49_s8 }
  0x27   :  { %s106_s9 = scalar_lea.vmem %s50_s8, 128  ;;  %p111_p3 = scmp.lt.s32.totalorder %s50_s8, %s50_s8 }
  0x28   :  { %42 = vst.msk [vmem:[#allocation9] sm:$0xff] %vm41_vm0, %v40_v2  ;;  %p107_p2 = scmp.ne.s32.totalorder %s50_s8, %s106_s9  ;;  %p112_p4 = scmp.lt.s32.totalorder %s106_s9, %s106_s9 }
  0x2a   :  { %p113_p5 = por %p112_p4, %p111_p3 }
  0x2c   :  { %p114_p6 = pnand %p113_p5, %p107_p2 }
  0x2e   :  { %117 = shalt.err (!%p114_p6)
}
  0x2f   :  { %s118_s11 = scalar_lea.hbm %s196_s3, 128 }
  0x30   :  { %p119_p7 = scmp.ne.s32.totalorder %s196_s3, %s118_s11  ;;  %p122_p8 = scmp.lt.u32.totalorder %s118_s11, %s196_s3 }
  0x32   :  { %p124_p9 = pnand %p122_p8, %p119_p7 }
  0x34   :  { %127 = shalt.err (!%p124_p9)
}
  0x35   :  { %52 = dma.vmem_to_hbm [thread:$0]  %s50_s8, 128, %s196_s3, [#allocation6]  }
  0x36   :  { %132 = dma.done.wait [#allocation6], 128  }
  0x37   :  { %133 = vsyncadd [#allocation6], 4294967168 }
  0x38   :  { %56 = vsyncpa [#allocation5], 1 }
  0x39   :  { %57 = vsyncpa [#allocation8], 1 }
  0x3a   :  { %58 = vsyncpa [#allocation6], 1 }

</bundles_post_ra>
